<compile_context>
chip_gen: v6e
topology: v6e:2x2x1
jax: 0.10.0
libtpu: 0.0.40
codegen_flags: <defaults>
</compile_context>

<pallas_src>
import functools

import jax
import jax.numpy as jnp
from jax.experimental import pallas as pl
from jax.experimental.pallas import tpu as pltpu


def _convt_sigmoid_kernel(w_ref, b_ref, x_ref, o_ref, *, K, H, W, OH, OW):
    # w_ref : (K*K,) SMEM — raw (unflipped) ConvTranspose2d weight, row-major (kh, kw)
    # b_ref : (1,)   SMEM — bias
    # x_ref : (B, H, W)   VMEM (channel dim squeezed away by the BlockSpec)
    # o_ref : (B, OH, OW) VMEM (channel dim squeezed away by the BlockSpec)

    # Hoist all scalar (SMEM) reads ahead of the vector work.
    w = [w_ref[i] for i in range(K * K)]
    b = b_ref[0]

    x = x_ref[...]                      # single full-ref load; stays vreg-resident
    B = x.shape[0]
    dt = x.dtype

    # Column-shifted copies: xcol[kw][:, :, ow] = x[:, :, ow - kw]  (OOB -> 0),
    # built by zero-concatenation along the lane axis (no VMEM scratch).
    xcol = []
    for kw in range(K):
        parts = []
        if kw:
            parts.append(jnp.zeros((B, H, kw), dt))
        parts.append(x)
        if K - 1 - kw:
            parts.append(jnp.zeros((B, H, K - 1 - kw), dt))
        xcol.append(jnp.concatenate(parts, axis=-1) if len(parts) > 1 else parts[0])

    # Per kernel-row kh: weighted combination of the column shifts (VPU work).
    # rows[kh][:, h, :] is the contribution landing on output row oh = h + kh.
    rows = []
    for kh in range(K):
        acc = xcol[0] * w[kh * K + 0]
        for kw in range(1, K):
            acc = acc + xcol[kw] * w[kh * K + kw]
        rows.append(acc)

    # Assemble the output by zero-padding each row contribution into place
    # along the sublane axis and summing.
    z = None
    for kh in range(K):
        parts = []
        if kh:
            parts.append(jnp.zeros((B, kh, OW), dt))
        parts.append(rows[kh])
        if K - 1 - kh:
            parts.append(jnp.zeros((B, K - 1 - kh, OW), dt))
        t = jnp.concatenate(parts, axis=-2) if len(parts) > 1 else parts[0]
        z = t if z is None else z + t

    z = z + b

    # sigmoid(z) = 0.5 * tanh(0.5 * z) + 0.5 : one EUP transcendental, exact.
    o_ref[...] = 0.5 * jnp.tanh(0.5 * z) + 0.5


def conv_transpose2d_sigmoid(x_nchw, weight, bias):
    """x_nchw: (B,1,H,W); weight: (1,1,K,K) (PyTorch ConvTranspose2d layout
    (C_in, C_out, kH, kW)); bias: (1,). Returns (B,1,H+K-1,W+K-1)."""
    B, C, H, W = x_nchw.shape
    assert C == 1
    K = weight.shape[-1]
    OH, OW = H + K - 1, W + K - 1

    # Flat 1-D scalar table for SMEM (no 2-D SMEM padding); raw, unflipped.
    w_flat = weight.reshape(K * K)

    kernel = functools.partial(_convt_sigmoid_kernel, K=K, H=H, W=W, OH=OH, OW=OW)

    flops = 2 * K * K * B * OH * OW                       # MACs -> 2 flops
    transcendentals = B * OH * OW                          # one tanh per output
    bytes_accessed = 4 * (B * H * W + B * OH * OW + K * K + 1)

    return pl.pallas_call(
        kernel,
        out_shape=jax.ShapeDtypeStruct((B, 1, OH, OW), jnp.float32),
        # No grid: the whole (tiny) batch is one kernel step.
        in_specs=[
            pl.BlockSpec(memory_space=pltpu.SMEM),                          # weight (K*K,)
            pl.BlockSpec(memory_space=pltpu.SMEM),                          # bias (1,)
            pl.BlockSpec((B, pl.Squeezed(), H, W), lambda: (0, 0, 0, 0)),   # x, channel squeezed
        ],
        out_specs=pl.BlockSpec((B, pl.Squeezed(), OH, OW), lambda: (0, 0, 0, 0)),
        cost_estimate=pl.CostEstimate(
            flops=flops,
            transcendentals=transcendentals,
            bytes_accessed=bytes_accessed,
        ),
    )(w_flat, bias, x_nchw)


def _reference(x, weight, bias):
    """Pure-JAX reference: ConvTranspose2d(stride=1, pad=0) + sigmoid."""
    B, _, H, W = x.shape
    K = weight.shape[-1]
    OH, OW = H + K - 1, W + K - 1
    xp = jnp.pad(x[:, 0], ((0, 0), (K - 1, K - 1), (K - 1, K - 1)))
    wf = weight[0, 0, ::-1, ::-1]
    z = sum(xp[:, kh:kh + OH, kw:kw + OW] * wf[kh, kw]
            for kh in range(K) for kw in range(K)) + bias[0]
    return jax.nn.sigmoid(z)[:, None, :, :]


if __name__ == "__main__":
    key = jax.random.PRNGKey(0)
    kx, kw, kb = jax.random.split(key, 3)

    # Input matching the PyTorch module: torch.randn(2, 1, 16, 16)
    x1 = jax.random.normal(kx, (2, 1, 16, 16), dtype=jnp.float32)

    # Deterministic ConvTranspose2d(1, 1, kernel_size=2) parameters.
    bound = 1.0 / (1 * 2 * 2) ** 0.5
    weight = jax.random.uniform(kw, (1, 1, 2, 2), jnp.float32, -bound, bound)
    bias = jax.random.uniform(kb, (1,), jnp.float32, -bound, bound)

    out = jax.jit(conv_transpose2d_sigmoid)(x1, weight, bias)
    out = jax.block_until_ready(out)
    assert out.shape == (2, 1, 17, 17), out.shape

    ref = _reference(x1, weight, bias)
    max_err = float(jnp.max(jnp.abs(out - ref)))
    assert jnp.allclose(out, ref, atol=1e-4, rtol=1e-4), max_err
    print("KERNEL_OK")
</pallas_src>

<mosaic_0001>
module attributes {stable_mosaic.version = 11 : i64} {
  func.func @_convt_sigmoid_kernel(%arg0: memref<4xf32, #tpu.memory_space<smem>>, %arg1: memref<1xf32, #tpu.memory_space<smem>>, %arg2: memref<2x1x16x16xf32, #tpu.memory_space<vmem>>, %arg3: memref<2x1x17x17xf32, #tpu.memory_space<vmem>>) attributes {dimension_semantics = [], scalar_prefetch = 0 : i64, scratch_operands = 0 : i64, tpu.core_type = #tpu.core_type<tc>} {
    %c0 = arith.constant 0 : index
    %0 = memref.load %arg0[%c0] : memref<4xf32, #tpu.memory_space<smem>>
    %c1 = arith.constant 1 : index
    %1 = memref.load %arg0[%c1] : memref<4xf32, #tpu.memory_space<smem>>
    %c2 = arith.constant 2 : index
    %2 = memref.load %arg0[%c2] : memref<4xf32, #tpu.memory_space<smem>>
    %c3 = arith.constant 3 : index
    %3 = memref.load %arg0[%c3] : memref<4xf32, #tpu.memory_space<smem>>
    %c0_0 = arith.constant 0 : index
    %4 = memref.load %arg1[%c0_0] : memref<1xf32, #tpu.memory_space<smem>>
    %c0_1 = arith.constant 0 : index
    %c0_2 = arith.constant 0 : index
    %c0_3 = arith.constant 0 : index
    %c0_4 = arith.constant 0 : index
    %5 = vector.load %arg2[%c0_1, %c0_2, %c0_3, %c0_4] : memref<2x1x16x16xf32, #tpu.memory_space<vmem>>, vector<2x1x16x16xf32>
    %6 = vector.shape_cast %5 : vector<2x1x16x16xf32> to vector<2x16x16xf32>
    %cst = arith.constant 0.000000e+00 : f32
    %7 = vector.broadcast %cst : f32 to vector<2x16x1xf32>
    %8 = tpu.concatenate %6, %7 in 2 : vector<2x16x16xf32>, vector<2x16x1xf32> -> vector<2x16x17xf32>
    %cst_5 = arith.constant 0.000000e+00 : f32
    %9 = vector.broadcast %cst_5 : f32 to vector<2x16x1xf32>
    %10 = tpu.concatenate %9, %6 in 2 : vector<2x16x1xf32>, vector<2x16x16xf32> -> vector<2x16x17xf32>
    %11 = vector.broadcast %0 : f32 to vector<2x16x17xf32>
    %12 = arith.mulf %8, %11 : vector<2x16x17xf32>
    %13 = vector.broadcast %1 : f32 to vector<2x16x17xf32>
    %14 = arith.mulf %10, %13 : vector<2x16x17xf32>
    %15 = arith.addf %12, %14 : vector<2x16x17xf32>
    %16 = vector.broadcast %2 : f32 to vector<2x16x17xf32>
    %17 = arith.mulf %8, %16 : vector<2x16x17xf32>
    %18 = vector.broadcast %3 : f32 to vector<2x16x17xf32>
    %19 = arith.mulf %10, %18 : vector<2x16x17xf32>
    %20 = arith.addf %17, %19 : vector<2x16x17xf32>
    %cst_6 = arith.constant 0.000000e+00 : f32
    %21 = vector.broadcast %cst_6 : f32 to vector<2x1x17xf32>
    %22 = tpu.concatenate %15, %21 in 1 : vector<2x16x17xf32>, vector<2x1x17xf32> -> vector<2x17x17xf32>
    %cst_7 = arith.constant 0.000000e+00 : f32
    %23 = vector.broadcast %cst_7 : f32 to vector<2x1x17xf32>
    %24 = tpu.concatenate %23, %20 in 1 : vector<2x1x17xf32>, vector<2x16x17xf32> -> vector<2x17x17xf32>
    %25 = arith.addf %22, %24 : vector<2x17x17xf32>
    %26 = vector.broadcast %4 : f32 to vector<2x17x17xf32>
    %27 = arith.addf %25, %26 : vector<2x17x17xf32>
    %cst_8 = arith.constant 5.000000e-01 : f32
    %28 = vector.broadcast %cst_8 : f32 to vector<2x17x17xf32>
    %29 = arith.mulf %28, %27 : vector<2x17x17xf32>
    %30 = math.tanh %29 : vector<2x17x17xf32>
    %cst_9 = arith.constant 5.000000e-01 : f32
    %31 = vector.broadcast %cst_9 : f32 to vector<2x17x17xf32>
    %32 = arith.mulf %31, %30 : vector<2x17x17xf32>
    %cst_10 = arith.constant 5.000000e-01 : f32
    %33 = vector.broadcast %cst_10 : f32 to vector<2x17x17xf32>
    %34 = arith.addf %32, %33 : vector<2x17x17xf32>
    %c0_11 = arith.constant 0 : index
    %c0_12 = arith.constant 0 : index
    %c0_13 = arith.constant 0 : index
    %c0_14 = arith.constant 0 : index
    %35 = vector.load %arg3[%c0_11, %c0_12, %c0_13, %c0_14] : memref<2x1x17x17xf32, #tpu.memory_space<vmem>>, vector<2x1x17x17xf32>
    %36 = vector.shape_cast %35 : vector<2x1x17x17xf32> to vector<2x17x17xf32>
    %37 = vector.shape_cast %34 : vector<2x17x17xf32> to vector<2x1x17x17xf32>
    tpu.vector_store %arg3[%c0_11, %c0_12, %c0_13, %c0_14], %37 {strides = array<i32>} : memref<2x1x17x17xf32, #tpu.memory_space<vmem>>, vector<2x1x17x17xf32>,
    return
  }
}

</mosaic_0001>

<bundles_post_ra>
// kernel: conv_transpose2d_sigmoid.1
= control target key start
LH: loop header
LB: loop body
LE: loop exit
PB: predicated region body
PF: predicated region fallthrough
CT: control target
= control target key end

     0   :  { %9 = vsyncpa [#allocation5], 0  ;;  %s295_s0 = inlined_call_operand.vmem [shape: f32[4], index: 0, kind: input, shape index: {}]   ;;  %s296_s1 = inlined_call_operand.<no memory space> [shape: f32[1], index: 1, kind: input, shape index: {}]   ;;  %s297_s2 = inlined_call_operand.hbm [shape: f32[2,1,16,16], index: 2, kind: input, shape index: {}]   ;;  %s298_s3 = inlined_call_operand.vmem [shape: f32[2,1,17,17], index: 3, kind: output, shape index: {}]  }
   0x1   :  { %s17_s14 = sshll.u32 %s295_s0, 4  ;;  %s18_s14 = int_to_ptr.vmem [resolvable:$true] %s17_s14 }
   0x2   :  { %10 = vsyncpa [#allocation4], 0  ;;  %s195_s15 = scalar_lea.vmem %s18_s14, 16  ;;  %p200_p1 = scmp.lt.s32.totalorder %s18_s14, %s18_s14 }
   0x3   :  { %p196_p0 = scmp.ne.s32.totalorder %s18_s14, %s195_s15  ;;  %p201_p2 = scmp.lt.s32.totalorder %s195_s15, %s195_s15 }
   0x5   :  { %p202_p3 = por %p201_p2, %p200_p1 }
   0x7   :  { %p203_p4 = pnand %p202_p3, %p196_p0 }
   0x9   :  { %206 = shalt.err (!%p203_p4)
}
   0xa   :  { %s231_s16 = smov [#allocation3]   ;;  %s232_s17 = smov [#allocation6]  }
   0xb   :  { %20 = dma.vmem_to_smem %s18_s14, 16, %s231_s16, [#allocation5]  }
   0xc   :  { %s28_s18 = sshll.u32 %s232_s17, 4  ;;  %s29_s18 = int_to_ptr.vmem [resolvable:$true] %s28_s18 }
   0xd   :  { %s215_s19 = scalar_lea.vmem %s29_s18, 512  ;;  %p220_p6 = scmp.lt.s32.totalorder %s29_s18, %s29_s18 }
   0xe   :  { %p216_p5 = scmp.ne.s32.totalorder %s29_s18, %s215_s19  ;;  %p221_p7 = scmp.lt.s32.totalorder %s215_s19, %s215_s19 }
  0x10   :  { %p222_p8 = por %p221_p7, %p220_p6 }
  0x12   :  { %p223_p9 = pnand %p222_p8, %p216_p5 }
  0x14   :  { %226 = shalt.err (!%p223_p9)
}
  0x15   :  { %s233_s0 = smov 128   ;;  %s234_s20 = smov 8  }
  0x16   :  { %34 = dma.hbm_to_vmem [thread:$0]  %s297_s2, 512, %s29_s18, [#allocation4], %s233_s0, %s233_s0, %s234_s20  }
  0x17   :  { %227 = dma.done.wait [#allocation5], 16  }
  0x18   :  { %228 = vsyncadd [#allocation5], 4294967280 }
  0x19   :  { %229 = dma.done.wait [#allocation4], 512  }
  0x1a   :  { %230 = vsyncadd [#allocation4], 4294966784 }
  0x1b   :  { %41 = sfence }
  0x1c   :  { %v49_v0 = vld [vmem:[#allocation6 + $0x10] sm:$0xff]  ;;  %v47_v1 = vld [vmem:[#allocation6] sm:$0xff]  ;;  %s235_s23 = smov 1   ;;  %v50_v2 = vld [vmem:[#allocation6 + $0x18] sm:$0xff]  ;;  %s176_s24 = sld [smem:[#allocation3 + $0x2]]  ;;  %vm51_vm0 = vcmask 130048   ;;  %v130_v18 = vstv %s296_s1 }
  0x1d   :  { %64 = vrot.lane.b32.xlu1 %v49_v0, %s235_s23  ;;  %60 = vrot.lane.b32.xlu0 %v47_v1, %s235_s23  ;;  %v48_v3 = vld [vmem:[#allocation6 + $0x8] sm:$0xff]  ;;  %s42_s25 = sld [smem:[#allocation3]]  ;;  %v54_v4 = vsel %vm51_vm0, %v49_v0, 0.0  ;;  %v52_v6 = vsel %vm51_vm0, %v47_v1, 0.0  ;;  %vm72_vm1 = vcmask 7168   ;;  %v55_v14 = vsel %vm51_vm0, %v50_v2, 0.0 }
  0x1e   :  { %s177_s26 = sld [smem:[#allocation3 + $0x3]]  ;;  %v53_v17 = vsel %vm51_vm0, %v48_v3, 0.0  ;;  %vm109_vm2 = vcmask 1040384   ;;  %vm161_vm3 = vcmask 138240   ;;  %vm164_vm4 = vcmask 131072  }
  0x1f   :  { %s175_s27 = sld [smem:[#allocation3 + $0x1]] }
  0x21   :  { %66 = vrot.lane.b32.xlu1 %v50_v2, %s235_s23  ;;  %62 = vrot.lane.b32.xlu0 %v48_v3, %s235_s23 }
  0x22   :  { %v91_v5 = vstv %s176_s24 }
  0x23   :  { %v77_v8 = vstv %s42_s25  ;;  %v94_v9 = vmul.f32 %v91_v5, %v54_v4  ;;  %v92_v10 = vmul.f32 %v91_v5, %v52_v6  ;;  %v95_v25 = vmul.f32 %v91_v5, %v55_v14 }
  0x24   :  { %v96_v7 = vstv %s177_s26  ;;  %v80_v21 = vmul.f32 %v77_v8, %v54_v4  ;;  %v78_v22 = vmul.f32 %v77_v8, %v52_v6  ;;  %v81_v30 = vmul.f32 %v77_v8, %v55_v14 }
  0x25   :  { %v82_v12 = vstv %s175_s27  ;;  %v93_v31 = vmul.f32 %v91_v5, %v53_v17  ;;  %v79_v34 = vmul.f32 %v77_v8, %v53_v17 }
  0x8f   :  { %v65_v11 = vpop.permute.xlu1 %64  ;;  %v61_v13 = vpop.permute.xlu0 %60 }
  0x90   :  { %v75_v15 = vsel %vm72_vm1, 0.0, %v65_v11  ;;  %v73_v16 = vsel %vm72_vm1, 0.0, %v61_v13 }
  0x91   :  { %v99_v19 = vmul.f32 %v96_v7, %v75_v15  ;;  %v97_v20 = vmul.f32 %v96_v7, %v73_v16  ;;  %v85_v23 = vmul.f32 %v82_v12, %v75_v15  ;;  %v83_v24 = vmul.f32 %v82_v12, %v73_v16 }
  0x93   :  { %v103_v26 = vadd.f32 %v99_v19, %v94_v9  ;;  %v101_v27 = vadd.f32 %v97_v20, %v92_v10  ;;  %v67_v28 = vpop.permute.xlu1 %66  ;;  %v63_v29 = vpop.permute.xlu0 %62  ;;  %v89_v38 = vadd.f32 %v85_v23, %v80_v21  ;;  %v87_v39 = vadd.f32 %v83_v24, %v78_v22 }
  0x94   :  { %v76_v32 = vsel %vm72_vm1, 0.0, %v67_v28  ;;  %v74_v33 = vsel %vm72_vm1, 0.0, %v63_v29 }
  0x95   :  { %v113_v35 = vrot.slane %v103_v26, 7  ;;  %v110_v36 = vrot.slane %v101_v27, 7  ;;  %v100_v37 = vmul.f32 %v96_v7, %v76_v32  ;;  %v86_v40 = vmul.f32 %v82_v12, %v76_v32 }
  0x96   :  { %v98_v41 = vmul.f32 %v96_v7, %v74_v33  ;;  %v84_v45 = vmul.f32 %v82_v12, %v74_v33 }
  0x97   :  { %v123_v42 = vsel %vm109_vm2, 0.0, %v113_v35  ;;  %v122_v43 = vsel %vm109_vm2, 0.0, %v110_v36  ;;  %v104_v44 = vadd.f32 %v100_v37, %v95_v25  ;;  %v90_v52 = vadd.f32 %v86_v40, %v81_v30 }
  0x98   :  { %v127_v46 = vadd.f32 %v123_v42, %v89_v38  ;;  %v124_v47 = vadd.f32 %v122_v43, %v87_v39  ;;  %v102_v48 = vadd.f32 %v98_v41, %v93_v31  ;;  %v88_v56 = vadd.f32 %v84_v45, %v79_v34 }
  0x99   :  { %v114_v49 = vrot.slane %v104_v44, 7 }
  0x9a   :  { %v134_v50 = vadd.f32 %v130_v18, %v127_v46  ;;  %v131_v51 = vadd.f32 %v130_v18, %v124_v47  ;;  %v111_v53 = vrot.slane %v102_v48, 7 }
  0x9b   :  { %v115_v54 = vsel %vm109_vm2, %v113_v35, %v114_v49  ;;  %v136_v55 = vadd.f32 %v130_v18, %v114_v49 }
  0x9c   :  { %v140_v57 = vmul.f32 0.5, %v134_v50  ;;  %v137_v58 = vmul.f32 0.5, %v131_v51  ;;  %v128_v59 = vadd.f32 %v115_v54, %v90_v52  ;;  %v112_v60 = vsel %vm109_vm2, %v110_v36, %v111_v53 }
  0x9d   :  { %v142_v61 = vmul.f32 0.5, %v136_v55  ;;  %v125_v62 = vadd.f32 %v112_v60, %v88_v56  ;;  %v133_v63 = vadd.f32 %v130_v18, %v111_v53 }
  0x9e   :  { %183 = vtanh.f32 %v140_v57  ;;  %v135_v0 = vadd.f32 %v130_v18, %v128_v59 }
  0x9f   :  { %185 = vtanh.f32 %v137_v58  ;;  %v132_v1 = vadd.f32 %v130_v18, %v125_v62  ;;  %v139_v2 = vmul.f32 0.5, %v133_v63 }
  0xa0   :  { %v141_v3 = vmul.f32 0.5, %v135_v0  ;;  %187 = vtanh.f32 %v142_v61 }
  0xa1   :  { %v138_v4 = vmul.f32 0.5, %v132_v1  ;;  %189 = vtanh.f32 %v139_v2 }
  0xa2   :  { %191 = vtanh.f32 %v141_v3 }
  0xa3   :  { %193 = vtanh.f32 %v138_v4 }
  0xab   :  { %v184_v5 = vpop.eup %183 }
  0xac   :  { %v186_v6 = vpop.eup %185  ;;  %v152_v7 = vmul.f32 0.5, %v184_v5 }
  0xad   :  { %v188_v8 = vpop.eup %187  ;;  %v149_v9 = vmul.f32 0.5, %v186_v6 }
  0xae   :  { %v190_v10 = vpop.eup %189  ;;  %v158_v11 = vadd.f32 0.5, %v152_v7  ;;  %v154_v12 = vmul.f32 0.5, %v188_v8 }
  0xaf   :  { %v192_v13 = vpop.eup %191  ;;  %v155_v14 = vadd.f32 0.5, %v149_v9  ;;  %v151_v15 = vmul.f32 0.5, %v190_v10 }
  0xb0   :  { %v194_v16 = vpop.eup %193  ;;  %166 = vst.msk [vmem:[%s298_s3 + $0x18] sm:$0xff] %vm161_vm3, %v158_v11  ;;  %v153_v17 = vmul.f32 0.5, %v192_v13  ;;  %v160_v18 = vadd.f32 0.5, %v154_v12 }
  0xb1   :  { %162 = vst.msk [vmem:[%s298_s3] sm:$0xff] %vm161_vm3, %v155_v14  ;;  %v150_v19 = vmul.f32 0.5, %v194_v16  ;;  %v157_v20 = vadd.f32 0.5, %v151_v15 }
  0xb2   :  { %v159_v21 = vadd.f32 0.5, %v153_v17  ;;  %168 = vst.msk [vmem:[%s298_s3 + $0x28] sm:$0x1] %vm164_vm4, %v160_v18 }
  0xb3   :  { %v156_v22 = vadd.f32 0.5, %v150_v19  ;;  %165 = vst.msk [vmem:[%s298_s3 + $0x10] sm:$0x1] %vm164_vm4, %v157_v20 }
  0xb4   :  { %167 = vst.msk [vmem:[%s298_s3 + $0x20] sm:$0xff] %vm161_vm3, %v159_v21 }
  0xb5   :  { %163 = vst.msk [vmem:[%s298_s3 + $0x8] sm:$0xff] %vm161_vm3, %v156_v22 }
  0xb6   :  { %173 = vsyncpa [#allocation4], 1 }
  0xb7   :  { %174 = vsyncpa [#allocation5], 1 }

</bundles_post_ra>
